<compile_context>
chip_gen: v5e
topology: v5e:2x2
jax: 0.10.0
libtpu: 0.0.40
codegen_flags: <defaults>
</compile_context>

<pallas_src>
import jax
import jax.numpy as jnp
from jax.experimental import pallas as pl
from jax.experimental.pallas import tpu as pltpu

INPUT_SIZE = 30 * 2 + 1   # 61
HIDDEN = 32

DATA_LANES = 128          # lane-dense per-call vector / output width
BIAS_LANE = 61            # data lane 61 == 1.0 -> multiplies the b_in row
EPS_OFFSET = 64           # data lanes 64..67 hold the 4 N(0,1) draws
CONST_LANE = HIDDEN       # s_full lane 32 == 1.0 -> multiplies head-bias row

TILE_B = 8                # f32 sublane tile; batch is padded to a multiple of 8

W_ROWS = 256              # packed weight slab: rows 0..127 input block,
HEAD_ROW0 = 128           #                     rows 128..255 head block
HEAD_B_ROW = HEAD_ROW0 + CONST_LANE      # 160: head biases (hit by s_full lane 32 == 1)
XROW_A = HEAD_ROW0 + 40   # 168: action_a cross row (hit by s_full lane 40 == 0 in the dot)
XROW_B = HEAD_ROW0 + 48   # 176: action_b cross row (lane 48 == 0)
XROW_C = HEAD_ROW0 + 56   # 184: action_c cross row (lane 56 == 0)
# constant mask / one-hot rows (all hit by always-zero s_full lanes 72..112)
MASK_EVEN_ROW = HEAD_ROW0 + 72    # 200: 1.0 at lanes 0,2,4,6 (mu lanes)
MASK_ODD_ROW = HEAD_ROW0 + 80     # 208: 1.0 at lanes 1,3,5,7 (sigma lanes)
OH_A_ROW = HEAD_ROW0 + 88         # 216: one-hot lane 8  (action_a)
OH_B_ROW = HEAD_ROW0 + 96         # 224: one-hot lane 9  (action_b)
OH_C_ROW = HEAD_ROW0 + 104        # 232: one-hot lane 10 (action_c)
OH_D_ROW = HEAD_ROW0 + 112        # 240: one-hot lane 11 (action_d)


def _softplus(v):
    # max(v,0) + log1p(exp(-|v|)): one exp, one log1p, no overflow; matches
    # torch.nn.functional.softplus (beta=1, threshold=20) to f32 precision.
    return jnp.maximum(v, 0.0) + jnp.log1p(jnp.exp(-jnp.abs(v)))


def _policy_kernel(data_ref, w_ref, out_ref):
    data = data_ref[...]                                            # (TB, 128)

    # ---- fc_input + ReLU (b_in folded via data lane 61 == 1.0) ----
    s_full = jnp.maximum(
        jnp.dot(data, w_ref[0:128, :], preferred_element_type=jnp.float32),
        0.0)                                                        # (TB, 128)
    # lanes 0..31 = s, lane 32 = 1.0 (constant generator), lanes 33..127 = 0

    # ---- all four heads' state contribution + biases in ONE full-width MXU dot ----
    base = jnp.dot(s_full, w_ref[128:256, :],
                   preferred_element_type=jnp.float32)              # (TB, 128)
    # lane 2k = mu-preact of head k, lane 2k+1 = sigma-preact; lanes 8..127 = 0

    # autoregressive cross-action rows (zero in the lanes they must not touch)
    row_a = w_ref[XROW_A:XROW_A + 1, :]                             # a -> b,c,d
    row_b = w_ref[XROW_B:XROW_B + 1, :]                             # b -> c,d
    row_c = w_ref[XROW_C:XROW_C + 1, :]                             # c -> d

    e_a = data[:, EPS_OFFSET + 0:EPS_OFFSET + 1]                    # (TB, 1)
    e_b = data[:, EPS_OFFSET + 1:EPS_OFFSET + 2]
    e_c = data[:, EPS_OFFSET + 2:EPS_OFFSET + 3]
    e_d = data[:, EPS_OFFSET + 3:EPS_OFFSET + 4]

    # head a
    mu_a = base[:, 0:1]
    ac_a = mu_a + _softplus(base[:, 1:2]) * e_a
    n_ab = base + ac_a * row_a          # lanes 2,3 now the true head-b preacts
    # head b
    mu_b = n_ab[:, 2:3]
    ac_b = mu_b + _softplus(n_ab[:, 3:4]) * e_b
    n_abc = n_ab + ac_b * row_b         # lanes 4,5 now the true head-c preacts
    # head c
    mu_c = n_abc[:, 4:5]
    ac_c = mu_c + _softplus(n_abc[:, 5:6]) * e_c
    n_full = n_abc + ac_c * row_c       # lanes 6,7 now the true head-d preacts
    # head d
    mu_d = n_full[:, 6:7]
    ac_d = mu_d + _softplus(n_full[:, 7:8]) * e_d

    # ---- single unmasked lane-dense store ----
    # lanes 0..7: mu_k at 2k, sigma_k at 2k+1 ; lanes 8..11: actions a..d;
    # lanes 12..127: zero.  Masks/one-hots are constant rows of the slab.
    even_m = w_ref[MASK_EVEN_ROW:MASK_EVEN_ROW + 1, :]
    odd_m = w_ref[MASK_ODD_ROW:MASK_ODD_ROW + 1, :]
    oh_a = w_ref[OH_A_ROW:OH_A_ROW + 1, :]
    oh_b = w_ref[OH_B_ROW:OH_B_ROW + 1, :]
    oh_c = w_ref[OH_C_ROW:OH_C_ROW + 1, :]
    oh_d = w_ref[OH_D_ROW:OH_D_ROW + 1, :]

    out_ref[...] = (n_full * even_m + _softplus(n_full) * odd_m
                    + ac_a * oh_a + ac_b * oh_b + ac_c * oh_c + ac_d * oh_d)


# --------------------------------------------------------------------------
# parameter construction / packing (all done ONCE, outside the call path)
# --------------------------------------------------------------------------
def _init_linear(key, fan_in, fan_out):
    # PyTorch-default-style init: U(-1/sqrt(fan_in), 1/sqrt(fan_in))
    k = 1.0 / float(fan_in) ** 0.5
    kw, kb = jax.random.split(key)
    w = jax.random.uniform(kw, (fan_in, fan_out), jnp.float32, -k, k)
    b = jax.random.uniform(kb, (1, fan_out), jnp.float32, -k, k)
    return w, b


def init_params(key):
    k0, k1, k2, k3, k4 = jax.random.split(key, 5)
    p = {}
    p["w_in"], p["b_in"] = _init_linear(k0, INPUT_SIZE, HIDDEN)
    p["wa"], p["ba"] = _init_linear(k1, HIDDEN, 2)
    p["wb"], p["bb"] = _init_linear(k2, 1 + HIDDEN, 2)
    p["wc"], p["bc"] = _init_linear(k3, 2 + HIDDEN, 2)
    p["wd"], p["bd"] = _init_linear(k4, 3 + HIDDEN, 2)
    return p


def pack_params(p):
    """One-time packing of all 17 weight/bias tensors into a (256, 128) slab."""
    w = jnp.zeros((W_ROWS, DATA_LANES), jnp.float32)
    # input block (rows 0..127): w_in, b_in row, constant-1 generator column.
    # Rows 62..127 MUST stay zero (eps lanes 64..67 / padding never leak into s).
    w = w.at[0:INPUT_SIZE, 0:HIDDEN].set(p["w_in"].astype(jnp.float32))
    w = w.at[BIAS_LANE, 0:HIDDEN].set(p["b_in"][0].astype(jnp.float32))
    w = w.at[BIAS_LANE, CONST_LANE].set(1.0)
    # head block (rows 128..255, lanes 0..7): fused [wa | wb_s | wc_s | wd_s]
    heads_w = jnp.concatenate(
        [p["wa"], p["wb"][:HIDDEN], p["wc"][:HIDDEN], p["wd"][:HIDDEN]], axis=1)
    w = w.at[HEAD_ROW0:HEAD_ROW0 + HIDDEN, 0:8].set(heads_w.astype(jnp.float32))
    heads_b = jnp.concatenate([p["ba"], p["bb"], p["bc"], p["bd"]], axis=1)
    w = w.at[HEAD_B_ROW, 0:8].set(heads_b[0].astype(jnp.float32))
    # autoregressive cross-action rows (torch cat order: (s, a, b, c))
    w = w.at[XROW_A, 2:4].set(p["wb"][HIDDEN])        # action_a -> head b
    w = w.at[XROW_A, 4:6].set(p["wc"][HIDDEN])        # action_a -> head c
    w = w.at[XROW_A, 6:8].set(p["wd"][HIDDEN])        # action_a -> head d
    w = w.at[XROW_B, 4:6].set(p["wc"][HIDDEN + 1])    # action_b -> head c
    w = w.at[XROW_B, 6:8].set(p["wd"][HIDDEN + 1])    # action_b -> head d
    w = w.at[XROW_C, 6:8].set(p["wd"][HIDDEN + 2])    # action_c -> head d
    # constant mask / one-hot rows for the epilogue (hit by zero s_full lanes)
    w = w.at[MASK_EVEN_ROW, 0:8:2].set(1.0)           # mu lanes 0,2,4,6
    w = w.at[MASK_ODD_ROW, 1:8:2].set(1.0)            # sigma lanes 1,3,5,7
    w = w.at[OH_A_ROW, 8].set(1.0)
    w = w.at[OH_B_ROW, 9].set(1.0)
    w = w.at[OH_C_ROW, 10].set(1.0)
    w = w.at[OH_D_ROW, 11].set(1.0)
    return w


# --------------------------------------------------------------------------
# forward
# --------------------------------------------------------------------------
@jax.jit
def _forward_jit(wslab, xb, epsb):
    """xb: (B, 61) states, epsb: (B, 4) N(0,1) draws -> packed (B, 128) output."""
    b = xb.shape[0]
    data = jnp.concatenate([
        xb.astype(jnp.float32),
        jnp.ones((b, 1), jnp.float32),                                   # lane 61
        jnp.zeros((b, EPS_OFFSET - INPUT_SIZE - 1), jnp.float32),        # lanes 62,63
        epsb.astype(jnp.float32),                                        # lanes 64..67
        jnp.zeros((b, DATA_LANES - EPS_OFFSET - 4), jnp.float32),        # lanes 68..127
    ], axis=1)                                                           # (B, 128)

    b_pad = ((b + TILE_B - 1) // TILE_B) * TILE_B
    if b_pad != b:
        data = jnp.concatenate(
            [data, jnp.zeros((b_pad - b, DATA_LANES), jnp.float32)], axis=0)

    out = pl.pallas_call(
        _policy_kernel,
        out_shape=jax.ShapeDtypeStruct((b_pad, DATA_LANES), jnp.float32),
        grid=(b_pad // TILE_B,),
        in_specs=[
            pl.BlockSpec((TILE_B, DATA_LANES), lambda i: (i, 0)),
            # constant block index -> weight slab DMA'd once, resident in VMEM
            pl.BlockSpec((W_ROWS, DATA_LANES), lambda i: (0, 0)),
        ],
        out_specs=pl.BlockSpec((TILE_B, DATA_LANES), lambda i: (i, 0)),
        compiler_params=pltpu.CompilerParams(
            dimension_semantics=("parallel",)),   # v7x: row-tiles split across TCs
    )(data, wslab)
    return out[:b]


def hd_autoregressive_policy_forward(wslab, x, eps):
    """Module-equivalent forward (x.view(1,-1) semantics). eps: 4 N(0,1) draws."""
    x = jnp.asarray(x, jnp.float32).reshape(-1)
    if x.shape[0] != INPUT_SIZE:
        raise ValueError(f"expected {INPUT_SIZE} input features, got {x.shape[0]}")
    eps = jnp.asarray(eps, jnp.float32).reshape(-1)
    if eps.shape[0] != 4:
        raise ValueError("expected 4 eps samples (one per action head)")
    out = _forward_jit(wslab, x.reshape(1, -1), eps.reshape(1, 4))       # (1, 128)
    mu = [out[:, 2 * k:2 * k + 1] for k in range(4)]          # each (1, 1)
    sigma = [out[:, 2 * k + 1:2 * k + 2] for k in range(4)]   # each (1, 1)
    actions = [out[0, 8 + k:9 + k] for k in range(4)]         # each (1,) like torch action_x[0]
    return mu, sigma, actions


def hd_policy_forward_batched(wslab, xs, eps):
    """Batched evaluation: xs (B, 61), eps (B, 4) -> mu (B,4), sigma (B,4), actions (B,4)."""
    xs = jnp.asarray(xs, jnp.float32)
    eps = jnp.asarray(eps, jnp.float32)
    out = _forward_jit(wslab, xs, eps)                                   # (B, 128)
    return out[:, 0:8:2], out[:, 1:8:2], out[:, 8:12]


# --------------------------------------------------------------------------
# pure-JAX reference (mirrors the PyTorch forward() exactly, batched over rows)
# --------------------------------------------------------------------------
def _ref_forward(p, x, eps):
    x = jnp.asarray(x, jnp.float32)        # (B, 61)
    eps = jnp.asarray(eps, jnp.float32)    # (B, 4)
    s = jax.nn.relu(x @ p["w_in"] + p["b_in"])

    def head(inp, w, b, e):
        n = inp @ w + b
        mu = n[:, :1]
        sg = jax.nn.softplus(n[:, 1:])
        return mu + sg * e, mu, sg

    ac_a, mu_a, sg_a = head(s, p["wa"], p["ba"], eps[:, 0:1])
    ac_b, mu_b, sg_b = head(jnp.concatenate([s, ac_a], 1), p["wb"], p["bb"], eps[:, 1:2])
    ac_c, mu_c, sg_c = head(jnp.concatenate([s, ac_a, ac_b], 1), p["wc"], p["bc"], eps[:, 2:3])
    ac_d, mu_d, sg_d = head(jnp.concatenate([s, ac_a, ac_b, ac_c], 1), p["wd"], p["bd"], eps[:, 3:4])
    return ([mu_a, mu_b, mu_c, mu_d],
            [sg_a, sg_b, sg_c, sg_d],
            [ac_a, ac_b, ac_c, ac_d])


if __name__ == "__main__":
    key = jax.random.PRNGKey(0)
    k_params, k_x, k_eps, k_xb, k_eb = jax.random.split(key, 5)

    params = init_params(k_params)
    wslab = pack_params(params)        # hoisted: packed once, reused every call

    # ---- module-equivalent single-state forward (batch of 1, x.view(1,-1)) ----
    x = jax.random.normal(k_x, (INPUT_SIZE,), jnp.float32)   # 30*2+1 = 61 features
    eps = jax.random.normal(k_eps, (1, 4), jnp.float32)      # sampling noise (a,b,c,d)

    mu, sigma, actions = hd_autoregressive_policy_forward(wslab, x, eps)
    jax.block_until_ready((mu, sigma, actions))

    mu_r, sg_r, ac_r = _ref_forward(params, x.reshape(1, -1), eps)
    ac_r1 = [a[0] for a in ac_r]       # torch returns action_x[0] -> shape (1,)
    for got, ref in zip(mu + sigma + actions, mu_r + sg_r + ac_r1):
        assert got.shape == ref.shape, (got.shape, ref.shape)
        assert jnp.allclose(got, ref, atol=2e-5, rtol=2e-5), (got, ref)

    # ---- batched rollout evaluation (B=5, padded to one (8,128) sublane tile) ----
    B = 5
    xb = jax.random.normal(k_xb, (B, INPUT_SIZE), jnp.float32)
    eb = jax.random.normal(k_eb, (B, 4), jnp.float32)
    mu_b, sg_b, ac_b = hd_policy_forward_batched(wslab, xb, eb)
    jax.block_until_ready((mu_b, sg_b, ac_b))

    mu_r, sg_r, ac_r = _ref_forward(params, xb, eb)
    assert jnp.allclose(mu_b, jnp.concatenate(mu_r, axis=1), atol=2e-5, rtol=2e-5)
    assert jnp.allclose(sg_b, jnp.concatenate(sg_r, axis=1), atol=2e-5, rtol=2e-5)
    assert jnp.allclose(ac_b, jnp.concatenate(ac_r, axis=1), atol=2e-5, rtol=2e-5)

    print("KERNEL_OK")
</pallas_src>

<mosaic_0001>
module attributes {stable_mosaic.version = 11 : i64} {
  func.func @_policy_kernel(%arg0: i32, %arg1: memref<8x128xf32, #tpu.memory_space<vmem>>, %arg2: memref<256x128xf32, #tpu.memory_space<vmem>>, %arg3: memref<8x128xf32, #tpu.memory_space<vmem>>) attributes {dimension_semantics = [#tpu.dimension_semantics<parallel>], iteration_bounds = array<i64: 1>, scalar_prefetch = 0 : i64, scratch_operands = 0 : i64, tpu.core_type = #tpu.core_type<tc>, window_params = [{transform_indices = @transform_0, window_bounds = array<i64: 8, 128>}, {pipeline_mode = #tpu.pipeline_mode<synchronous>, transform_indices = @transform_1, window_bounds = array<i64: 256, 128>}, {transform_indices = @transform_2, window_bounds = array<i64: 8, 128>}]} {
    %c0 = arith.constant 0 : index
    %c0_0 = arith.constant 0 : index
    %0 = vector.load %arg1[%c0, %c0_0] : memref<8x128xf32, #tpu.memory_space<vmem>>, vector<8x128xf32>
    %c0_1 = arith.constant 0 : index
    %c0_2 = arith.constant 0 : index
    %1 = vector.load %arg2[%c0_1, %c0_2] : memref<256x128xf32, #tpu.memory_space<vmem>>, vector<128x128xf32>
    %cst = arith.constant dense<0.000000e+00> : vector<8x128xf32>
    %2 = tpu.matmul %0, %1, %cst {dimension_numbers = #tpu.dot_dimension_numbers<[1], [0], [0], [1], [0, 0, 1, 1], [], []>} : vector<8x128xf32>, vector<128x128xf32>, vector<8x128xf32> -> vector<8x128xf32>
    %cst_3 = arith.constant 0.000000e+00 : f32
    %3 = vector.broadcast %cst_3 : f32 to vector<8x128xf32>
    %4 = arith.maximumf %2, %3 : vector<8x128xf32>
    %c128 = arith.constant 128 : index
    %c0_4 = arith.constant 0 : index
    %5 = vector.load %arg2[%c128, %c0_4] : memref<256x128xf32, #tpu.memory_space<vmem>>, vector<128x128xf32>
    %cst_5 = arith.constant dense<0.000000e+00> : vector<8x128xf32>
    %6 = tpu.matmul %4, %5, %cst_5 {dimension_numbers = #tpu.dot_dimension_numbers<[1], [0], [0], [1], [0, 0, 1, 1], [], []>} : vector<8x128xf32>, vector<128x128xf32>, vector<8x128xf32> -> vector<8x128xf32>
    %c168 = arith.constant 168 : index
    %c0_6 = arith.constant 0 : index
    %7 = vector.load %arg2[%c168, %c0_6] : memref<256x128xf32, #tpu.memory_space<vmem>>, vector<1x128xf32>
    %c176 = arith.constant 176 : index
    %c0_7 = arith.constant 0 : index
    %8 = vector.load %arg2[%c176, %c0_7] : memref<256x128xf32, #tpu.memory_space<vmem>>, vector<1x128xf32>
    %c184 = arith.constant 184 : index
    %c0_8 = arith.constant 0 : index
    %9 = vector.load %arg2[%c184, %c0_8] : memref<256x128xf32, #tpu.memory_space<vmem>>, vector<1x128xf32>
    %10 = vector.extract_strided_slice %0 {offsets = [0, 64], sizes = [8, 1], strides = [1, 1]} : vector<8x128xf32> to vector<8x1xf32>
    %11 = vector.extract_strided_slice %0 {offsets = [0, 65], sizes = [8, 1], strides = [1, 1]} : vector<8x128xf32> to vector<8x1xf32>
    %12 = vector.extract_strided_slice %0 {offsets = [0, 66], sizes = [8, 1], strides = [1, 1]} : vector<8x128xf32> to vector<8x1xf32>
    %13 = vector.extract_strided_slice %0 {offsets = [0, 67], sizes = [8, 1], strides = [1, 1]} : vector<8x128xf32> to vector<8x1xf32>
    %14 = vector.extract_strided_slice %6 {offsets = [0, 0], sizes = [8, 1], strides = [1, 1]} : vector<8x128xf32> to vector<8x1xf32>
    %15 = vector.extract_strided_slice %6 {offsets = [0, 1], sizes = [8, 1], strides = [1, 1]} : vector<8x128xf32> to vector<8x1xf32>
    %cst_9 = arith.constant 0.000000e+00 : f32
    %16 = vector.broadcast %cst_9 : f32 to vector<8x1xf32>
    %17 = arith.maximumf %15, %16 : vector<8x1xf32>
    %18 = math.absf %15 : vector<8x1xf32>
    %cst_10 = arith.constant 0.000000e+00 : f32
    %19 = vector.broadcast %cst_10 : f32 to vector<8x1xf32>
    %20 = arith.subf %19, %18 : vector<8x1xf32>
    %21 = math.exp %20 : vector<8x1xf32>
    %22 = math.log1p %21 : vector<8x1xf32>
    %23 = arith.addf %17, %22 : vector<8x1xf32>
    %24 = arith.mulf %23, %10 : vector<8x1xf32>
    %25 = arith.addf %14, %24 : vector<8x1xf32>
    %26 = vector.broadcast %25 : vector<8x1xf32> to vector<8x128xf32>
    %27 = vector.broadcast %7 : vector<1x128xf32> to vector<8x128xf32>
    %28 = arith.mulf %26, %27 : vector<8x128xf32>
    %29 = arith.addf %6, %28 : vector<8x128xf32>
    %30 = vector.extract_strided_slice %29 {offsets = [0, 2], sizes = [8, 1], strides = [1, 1]} : vector<8x128xf32> to vector<8x1xf32>
    %31 = vector.extract_strided_slice %29 {offsets = [0, 3], sizes = [8, 1], strides = [1, 1]} : vector<8x128xf32> to vector<8x1xf32>
    %cst_11 = arith.constant 0.000000e+00 : f32
    %32 = vector.broadcast %cst_11 : f32 to vector<8x1xf32>
    %33 = arith.maximumf %31, %32 : vector<8x1xf32>
    %34 = math.absf %31 : vector<8x1xf32>
    %cst_12 = arith.constant 0.000000e+00 : f32
    %35 = vector.broadcast %cst_12 : f32 to vector<8x1xf32>
    %36 = arith.subf %35, %34 : vector<8x1xf32>
    %37 = math.exp %36 : vector<8x1xf32>
    %38 = math.log1p %37 : vector<8x1xf32>
    %39 = arith.addf %33, %38 : vector<8x1xf32>
    %40 = arith.mulf %39, %11 : vector<8x1xf32>
    %41 = arith.addf %30, %40 : vector<8x1xf32>
    %42 = vector.broadcast %41 : vector<8x1xf32> to vector<8x128xf32>
    %43 = vector.broadcast %8 : vector<1x128xf32> to vector<8x128xf32>
    %44 = arith.mulf %42, %43 : vector<8x128xf32>
    %45 = arith.addf %29, %44 : vector<8x128xf32>
    %46 = vector.extract_strided_slice %45 {offsets = [0, 4], sizes = [8, 1], strides = [1, 1]} : vector<8x128xf32> to vector<8x1xf32>
    %47 = vector.extract_strided_slice %45 {offsets = [0, 5], sizes = [8, 1], strides = [1, 1]} : vector<8x128xf32> to vector<8x1xf32>
    %cst_13 = arith.constant 0.000000e+00 : f32
    %48 = vector.broadcast %cst_13 : f32 to vector<8x1xf32>
    %49 = arith.maximumf %47, %48 : vector<8x1xf32>
    %50 = math.absf %47 : vector<8x1xf32>
    %cst_14 = arith.constant 0.000000e+00 : f32
    %51 = vector.broadcast %cst_14 : f32 to vector<8x1xf32>
    %52 = arith.subf %51, %50 : vector<8x1xf32>
    %53 = math.exp %52 : vector<8x1xf32>
    %54 = math.log1p %53 : vector<8x1xf32>
    %55 = arith.addf %49, %54 : vector<8x1xf32>
    %56 = arith.mulf %55, %12 : vector<8x1xf32>
    %57 = arith.addf %46, %56 : vector<8x1xf32>
    %58 = vector.broadcast %57 : vector<8x1xf32> to vector<8x128xf32>
    %59 = vector.broadcast %9 : vector<1x128xf32> to vector<8x128xf32>
    %60 = arith.mulf %58, %59 : vector<8x128xf32>
    %61 = arith.addf %45, %60 : vector<8x128xf32>
    %62 = vector.extract_strided_slice %61 {offsets = [0, 6], sizes = [8, 1], strides = [1, 1]} : vector<8x128xf32> to vector<8x1xf32>
    %63 = vector.extract_strided_slice %61 {offsets = [0, 7], sizes = [8, 1], strides = [1, 1]} : vector<8x128xf32> to vector<8x1xf32>
    %cst_15 = arith.constant 0.000000e+00 : f32
    %64 = vector.broadcast %cst_15 : f32 to vector<8x1xf32>
    %65 = arith.maximumf %63, %64 : vector<8x1xf32>
    %66 = math.absf %63 : vector<8x1xf32>
    %cst_16 = arith.constant 0.000000e+00 : f32
    %67 = vector.broadcast %cst_16 : f32 to vector<8x1xf32>
    %68 = arith.subf %67, %66 : vector<8x1xf32>
    %69 = math.exp %68 : vector<8x1xf32>
    %70 = math.log1p %69 : vector<8x1xf32>
    %71 = arith.addf %65, %70 : vector<8x1xf32>
    %72 = arith.mulf %71, %13 : vector<8x1xf32>
    %73 = arith.addf %62, %72 : vector<8x1xf32>
    %c200 = arith.constant 200 : index
    %c0_17 = arith.constant 0 : index
    %74 = vector.load %arg2[%c200, %c0_17] : memref<256x128xf32, #tpu.memory_space<vmem>>, vector<1x128xf32>
    %c208 = arith.constant 208 : index
    %c0_18 = arith.constant 0 : index
    %75 = vector.load %arg2[%c208, %c0_18] : memref<256x128xf32, #tpu.memory_space<vmem>>, vector<1x128xf32>
    %c216 = arith.constant 216 : index
    %c0_19 = arith.constant 0 : index
    %76 = vector.load %arg2[%c216, %c0_19] : memref<256x128xf32, #tpu.memory_space<vmem>>, vector<1x128xf32>
    %c224 = arith.constant 224 : index
    %c0_20 = arith.constant 0 : index
    %77 = vector.load %arg2[%c224, %c0_20] : memref<256x128xf32, #tpu.memory_space<vmem>>, vector<1x128xf32>
    %c232 = arith.constant 232 : index
    %c0_21 = arith.constant 0 : index
    %78 = vector.load %arg2[%c232, %c0_21] : memref<256x128xf32, #tpu.memory_space<vmem>>, vector<1x128xf32>
    %c240 = arith.constant 240 : index
    %c0_22 = arith.constant 0 : index
    %79 = vector.load %arg2[%c240, %c0_22] : memref<256x128xf32, #tpu.memory_space<vmem>>, vector<1x128xf32>
    %80 = vector.broadcast %74 : vector<1x128xf32> to vector<8x128xf32>
    %81 = arith.mulf %61, %80 : vector<8x128xf32>
    %cst_23 = arith.constant 0.000000e+00 : f32
    %82 = vector.broadcast %cst_23 : f32 to vector<8x128xf32>
    %83 = arith.maximumf %61, %82 : vector<8x128xf32>
    %84 = math.absf %61 : vector<8x128xf32>
    %cst_24 = arith.constant 0.000000e+00 : f32
    %85 = vector.broadcast %cst_24 : f32 to vector<8x128xf32>
    %86 = arith.subf %85, %84 : vector<8x128xf32>
    %87 = math.exp %86 : vector<8x128xf32>
    %88 = math.log1p %87 : vector<8x128xf32>
    %89 = arith.addf %83, %88 : vector<8x128xf32>
    %90 = vector.broadcast %75 : vector<1x128xf32> to vector<8x128xf32>
    %91 = arith.mulf %89, %90 : vector<8x128xf32>
    %92 = arith.addf %81, %91 : vector<8x128xf32>
    %93 = vector.broadcast %25 : vector<8x1xf32> to vector<8x128xf32>
    %94 = vector.broadcast %76 : vector<1x128xf32> to vector<8x128xf32>
    %95 = arith.mulf %93, %94 : vector<8x128xf32>
    %96 = arith.addf %92, %95 : vector<8x128xf32>
    %97 = vector.broadcast %41 : vector<8x1xf32> to vector<8x128xf32>
    %98 = vector.broadcast %77 : vector<1x128xf32> to vector<8x128xf32>
    %99 = arith.mulf %97, %98 : vector<8x128xf32>
    %100 = arith.addf %96, %99 : vector<8x128xf32>
    %101 = vector.broadcast %57 : vector<8x1xf32> to vector<8x128xf32>
    %102 = vector.broadcast %78 : vector<1x128xf32> to vector<8x128xf32>
    %103 = arith.mulf %101, %102 : vector<8x128xf32>
    %104 = arith.addf %100, %103 : vector<8x128xf32>
    %105 = vector.broadcast %73 : vector<8x1xf32> to vector<8x128xf32>
    %106 = vector.broadcast %79 : vector<1x128xf32> to vector<8x128xf32>
    %107 = arith.mulf %105, %106 : vector<8x128xf32>
    %108 = arith.addf %104, %107 : vector<8x128xf32>
    %c0_25 = arith.constant 0 : index
    %c0_26 = arith.constant 0 : index
    %109 = vector.load %arg3[%c0_25, %c0_26] : memref<8x128xf32, #tpu.memory_space<vmem>>, vector<8x128xf32>
    tpu.vector_store %arg3[%c0_25, %c0_26], %108 {strides = array<i32>} : memref<8x128xf32, #tpu.memory_space<vmem>>, vector<8x128xf32>,
    return
  }
  func.func @transform_0(%arg0: i32) -> (i32, i32) {
    %c0_i32 = arith.constant 0 : i32
    %c0_i32_0 = arith.constant 0 : i32
    return %arg0, %c0_i32 : i32, i32
  }
  func.func @transform_1(%arg0: i32) -> (i32, i32) {
    %c0_i32 = arith.constant 0 : i32
    %c0_i32_0 = arith.constant 0 : i32
    %c0_i32_1 = arith.constant 0 : i32
    return %c0_i32, %c0_i32_0 : i32, i32
  }
  func.func @transform_2(%arg0: i32) -> (i32, i32) {
    %c0_i32 = arith.constant 0 : i32
    %c0_i32_0 = arith.constant 0 : i32
    return %arg0, %c0_i32 : i32, i32
  }
}

</mosaic_0001>

<bundles_post_ra>
// kernel: _forward_jit.1
= control target key start
LH: loop header
LB: loop body
LE: loop exit
PB: predicated region body
PF: predicated region fallthrough
CT: control target
= control target key end

     0   :  { %7 = vsyncpa [#allocation3], 0  ;;  %s327_s12 = smov [#allocation2]   ;;  %s328_s14 = smov 128   ;;  %s382_s0 = inlined_call_operand.vmem [shape: f32[8,128], index: 0, kind: input, shape index: {}]   ;;  %s383_s1 = inlined_call_operand.hbm [shape: f32[256,128], index: 1, kind: input, shape index: {}]   ;;  %s384_s2 = inlined_call_operand.vmem [shape: f32[8,128], index: 2, kind: output, shape index: {}]  }
   0x1   :  { %s14_s11 = sshll.u32 %s383_s1, 4  ;;  %s16_s13 = sshll.u32 %s327_s12, 4  ;;  %s15_s11 = int_to_ptr.hbm [resolvable:$true] %s14_s11  ;;  %s17_s13 = int_to_ptr.vmem [resolvable:$true] %s16_s13 }
   0x2   :  { %s329_s15 = smov 8  }
   0x3   :  { %22 = dma.hbm_to_vmem [thread:$0]  %s15_s11, 4096, %s17_s13, [#allocation3], %s328_s14, %s328_s14, %s329_s15  }
   0x4   :  { %325 = dma.done.wait [#allocation3], 4096  }
   0x5   :  { %326 = vsyncadd [#allocation3], 4294963200  ;;  %v43_v0 = vld [vmem:[#allocation2 + $0x78] sm:$0xff]  ;;  %v42_v1 = vld [vmem:[#allocation2 + $0x70] sm:$0xff]  ;;  %s330_s17 = smov 65   ;;  %v332_v52 = vmov 0  }
   0x6   :  { %44 = vmatpush.msra.mxu0 %v43_v0  ;;  %v41_v2 = vld [vmem:[#allocation2 + $0x68] sm:$0xff]  ;;  %v40_v3 = vld [vmem:[#allocation2 + $0x60] sm:$0xff]  ;;  %v80_v4 = vld [vmem:[#allocation2 + $0xf8] sm:$0xff]  ;;  %271 = vset.pattern.permute.xlu1 %v332_v52  ;;  %s333_s18 = smov 66   ;;  %s334_s19 = smov 67  }
   0x7   :  { %v39_v5 = vld [vmem:[#allocation2 + $0x58] sm:$0xff]  ;;  %81 = vmatpush.msra.mxu1 %v80_v4  ;;  %v79_v6 = vld [vmem:[#allocation2 + $0xf0] sm:$0xff]  ;;  %v78_v7 = vld [vmem:[#allocation2 + $0xe8] sm:$0xff]  ;;  %s336_s20 = smov 68  }
   0x8   :  { %45 = vmatpush.msra.mxu0 %v42_v1  ;;  %v38_v8 = vld [vmem:[#allocation2 + $0x50] sm:$0xff]  ;;  %v37_v9 = vld [vmem:[#allocation2 + $0x48] sm:$0xff]  ;;  %v77_v10 = vld [vmem:[#allocation2 + $0xe0] sm:$0xff] }
   0x9   :  { %82 = vmatpush.msra.mxu1 %v79_v6  ;;  %v36_v11 = vld [vmem:[#allocation2 + $0x40] sm:$0xff]  ;;  %v76_v12 = vld [vmem:[#allocation2 + $0xd8] sm:$0xff]  ;;  %v75_v13 = vld [vmem:[#allocation2 + $0xd0] sm:$0xff] }
   0xa   :  { %46 = vmatpush.msra.mxu0 %v41_v2  ;;  %v35_v14 = vld [vmem:[#allocation2 + $0x38] sm:$0xff]  ;;  %v74_v15 = vld [vmem:[#allocation2 + $0xc8] sm:$0xff]  ;;  %v34_v16 = vld [vmem:[#allocation2 + $0x30] sm:$0xff] }
   0xb   :  { %83 = vmatpush.msra.mxu1 %v78_v7  ;;  %v73_v17 = vld [vmem:[#allocation2 + $0xc0] sm:$0xff]  ;;  %v33_v18 = vld [vmem:[#allocation2 + $0x28] sm:$0xff]  ;;  %v72_v19 = vld [vmem:[#allocation2 + $0xb8] sm:$0xff] }
   0xc   :  { %47 = vmatpush.msra.mxu0 %v40_v3  ;;  %v32_v20 = vld [vmem:[#allocation2 + $0x20] sm:$0xff]  ;;  %v71_v21 = vld [vmem:[#allocation2 + $0xb0] sm:$0xff]  ;;  %v31_v22 = vld [vmem:[#allocation2 + $0x18] sm:$0xff] }
   0xd   :  { %84 = vmatpush.msra.mxu1 %v77_v10  ;;  %v70_v23 = vld [vmem:[#allocation2 + $0xa8] sm:$0xff]  ;;  %v30_v24 = vld [vmem:[#allocation2 + $0x10] sm:$0xff]  ;;  %v69_v25 = vld [vmem:[#allocation2 + $0xa0] sm:$0xff] }
   0xe   :  { %48 = vmatpush.msra.mxu0 %v39_v5  ;;  %v29_v26 = vld [vmem:[#allocation2 + $0x8] sm:$0xff]  ;;  %v68_v27 = vld [vmem:[#allocation2 + $0x98] sm:$0xff]  ;;  %v28_v28 = vld [vmem:[#allocation2] sm:$0xff] }
   0xf   :  { %85 = vmatpush.msra.mxu1 %v76_v12  ;;  %v360_v29 = vld [vmem:[%s382_s0] sm:$0xff]  ;;  %v67_v30 = vld [vmem:[#allocation2 + $0x90] sm:$0xff]  ;;  %v66_v31 = vld [vmem:[#allocation2 + $0x88] sm:$0xff]  ;;  %s331_s0 = smov 127  }
  0x10   :  { %49 = vmatpush.msra.mxu0 %v38_v8  ;;  %120 = vrot.lane.b32.xlu0 %v360_v29, %s330_s17  ;;  %v65_v32 = vld [vmem:[#allocation2 + $0x80] sm:$0xff]  ;;  %v276_v55 = vld [vmem:[#allocation2 + $0xa8] ss:$0 sm:$0xff] }
  0x11   :  { %86 = vmatpush.msra.mxu1 %v75_v13  ;;  %v282_v52 = vld [vmem:[#allocation2 + $0xc8] ss:$0 sm:$0xff] }
  0x12   :  { %50 = vmatpush.msra.mxu0 %v37_v9 }
  0x13   :  { %87 = vmatpush.msra.mxu1 %v74_v15 }
  0x14   :  { %51 = vmatpush.msra.mxu0 %v36_v11  ;;  %v335_v11 = vmov 2  }
  0x15   :  { %88 = vmatpush.msra.mxu1 %v73_v17  ;;  %272 = vset.pattern.permute.xlu2 %v335_v11 }
  0x16   :  { %52 = vmatpush.msra.mxu0 %v35_v14  ;;  %v278_v14 = vld [vmem:[#allocation2 + $0xb0] ss:$0 sm:$0xff] }
  0x17   :  { %89 = vmatpush.msra.mxu1 %v72_v19 }
  0x18   :  { %53 = vmatpush.msra.mxu0 %v34_v16 }
  0x19   :  { %90 = vmatpush.msra.mxu1 %v71_v21 }
  0x1a   :  { %54 = vmatpush.msra.mxu0 %v33_v18 }
  0x1b   :  { %91 = vmatpush.msra.mxu1 %v70_v23 }
  0x1c   :  { %55 = vmatpush.msra.mxu0 %v32_v20 }
  0x1d   :  { %92 = vmatpush.msra.mxu1 %v69_v25 }
  0x1e   :  { %56 = vmatpush.msra.mxu0 %v31_v22 }
  0x1f   :  { %93 = vmatpush.msra.mxu1 %v68_v27 }
  0x20   :  { %57 = vmatpush.msra.mxu0 %v30_v24 }
  0x21   :  { %94 = vmatpush.msra.mxu1 %v67_v30 }
  0x22   :  { %58 = vmatpush.msra.mxu0 %v29_v26 }
  0x23   :  { %95 = vmatpush.msra.mxu1 %v66_v31 }
  0x24   :  { %59 = vmatpush.msra.mxu0 %v28_v28 }
  0x25   :  { %60 = vmatmul.f32.vlgmr.msra.gmra.mxu0 %v360_v29  ;;  %96 = vmatpush.msra.mxu1 %v65_v32 }
  0x82   :  { %v121_v48 = vpop.permute.xlu0 %120 }
  0xa2   :  { %v61_v33 = vpop.f32.mrf.mxu0 }
  0xa3   :  { %v64_v34 = vmax.f32 %v61_v33, 0.0 }
  0xa5   :  { %97 = vmatmul.f32.vlgmr.msra.gmra.mxu1 %v64_v34 }
 0x122   :  { %v98_v35 = vpop.f32.mrf.mxu1 }
 0x123   :  { %v105_v36 = vand.u32 2147483647, %v98_v35  ;;  %v104_v47 = vmax.f32 %v98_v35, 0.0 }
 0x125   :  { %v106_v37 = vsub.f32 0.0, %v105_v36 }
 0x127   :  { %v107_v38 = vmul.f32 1.442695, %v106_v37 }
 0x129   :  { %285 = vpow2.f32 %v107_v38  ;;  %v280_v38 = vld [vmem:[#allocation2 + $0xb8] ss:$0 sm:$0xff] }
 0x12f   :  { %v286_v39 = vpop.eup %285 }
 0x130   :  { %v109_v40 = vadd.f32 1.0, %v286_v39  ;;  %v112_v41 = vmul.f32 -0.5, %v286_v39  ;;  %v115_v43 = vand.u32 2147483647, %v286_v39 }
 0x132   :  { %287 = vlog2.f32 %v109_v40  ;;  %v113_v42 = vadd.f32 1.0, %v112_v41  ;;  %vm116_vm0 = vcmp.lt.f32.partialorder %v115_v43, 0.0004427343 }
 0x134   :  { %v114_v46 = vmul.f32 %v286_v39, %v113_v42 }
 0x138   :  { %v288_v44 = vpop.eup %287 }
 0x139   :  { %v111_v45 = vmul.f32 0.6931472, %v288_v44 }
 0x13b   :  { %v117_v49 = vsel %vm116_vm0, %v114_v46, %v111_v45 }
 0x13c   :  { %v118_v50 = vadd.f32 %v117_v49, %v104_v47 }
 0x13e   :  { %v123_v51 = vmul.f32 %v121_v48, %v118_v50 }
 0x140   :  { %125 = vrot.lane.b32.xlu0 %v123_v51, %s331_s0 }
 0x148   :  { %184 = vrot.lane.b32.xlu0 %v360_v29, %s334_s19 }
 0x150   :  { %216 = vrot.lane.b32.xlu0 %v360_v29, %s336_s20 }
 0x1b2   :  { %v126_v53 = vpop.permute.xlu0 %125 }
 0x1b3   :  { %v128_v54 = vadd.f32 %v126_v53, %v98_v35 }
 0x1b5   :  { %131 = vperm.xlu1 %271, %v128_v54   ;;  %v283_v54 = vld [vmem:[#allocation2 + $0xd0] ss:$0 sm:$0xff] }
 0x1ba   :  { %v185_v32 = vpop.permute.xlu0 %184 }
 0x1bd   :  { %152 = vrot.lane.b32.xlu1 %v360_v29, %s333_s18 }
 0x227   :  { %v366_v56 = vpop.permute.xlu1 %131 }
 0x228   :  { %v135_v57 = vmul.f32 %v276_v55, %v366_v56 }
 0x22a   :  { %v136_v58 = vadd.f32 %v135_v57, %v98_v35  ;;  %v337_v35 = vmov 4   ;;  %v217_v57 = vpop.permute.xlu0 %216 }
 0x22c   :  { %v138_v59 = vand.u32 2147483647, %v136_v58  ;;  %v137_v6 = vmax.f32 %v136_v58, 0.0 }
 0x22e   :  { %v139_v60 = vsub.f32 0.0, %v138_v59 }
 0x22f   :  { %v153_v8 = vpop.permute.xlu1 %152 }
 0x230   :  { %v140_v61 = vmul.f32 1.442695, %v139_v60 }
 0x232   :  { %289 = vpow2.f32 %v140_v61 }
 0x238   :  { %v290_v62 = vpop.eup %289 }
 0x239   :  { %v142_v63 = vadd.f32 1.0, %v290_v62  ;;  %v145_v0 = vmul.f32 -0.5, %v290_v62  ;;  %v148_v2 = vand.u32 2147483647, %v290_v62 }
 0x23b   :  { %291 = vlog2.f32 %v142_v63  ;;  %v146_v1 = vadd.f32 1.0, %v145_v0  ;;  %vm149_vm1 = vcmp.lt.f32.partialorder %v148_v2, 0.0004427343  ;;  %v338_v2 = vmov 6  }
 0x23c   :  { %275 = vset.pattern.permute.xlu0 %v338_v2 }
 0x23d   :  { %v147_v5 = vmul.f32 %v290_v62, %v146_v1 }
 0x241   :  { %v292_v3 = vpop.eup %291 }
 0x242   :  { %v144_v4 = vmul.f32 0.6931472, %v292_v3 }
 0x244   :  { %v150_v7 = vsel %vm149_vm1, %v147_v5, %v144_v4  ;;  %v279_v5 = vld [vmem:[#allocation2 + $0xe0] ss:$0 sm:$0xff] }
 0x245   :  { %v151_v9 = vadd.f32 %v150_v7, %v137_v6  ;;  %v281_v7 = vld [vmem:[#allocation2 + $0xe8] ss:$0 sm:$0xff] }
 0x247   :  { %v155_v10 = vmul.f32 %v153_v8, %v151_v9  ;;  %v284_v9 = vld [vmem:[#allocation2 + $0xf0] ss:$0 sm:$0xff] }
 0x249   :  { %157 = vrot.lane.b32.xlu2 %v155_v10, %s331_s0 }
 0x2a3   :  { %v158_v12 = vpop.permute.xlu2 %157 }
 0x2a4   :  { %v160_v13 = vadd.f32 %v158_v12, %v136_v58 }
 0x2a6   :  { %163 = vperm.xlu2 %272, %v160_v13  }
 0x2ae   :  { %273 = vset.pattern.permute.xlu2 %v337_v35 }
 0x300   :  { %v371_v15 = vpop.permute.xlu2 %163 }
 0x301   :  { %v167_v16 = vmul.f32 %v278_v14, %v371_v15  ;;  %v240_v6 = vmul.f32 %v279_v5, %v371_v15 }
 0x303   :  { %v168_v17 = vadd.f32 %v167_v16, %v136_v58  ;;  %v277_v58 = vld [vmem:[#allocation2 + $0xd8] ss:$0 sm:$0xff] }
 0x304   :  { %v237_v63 = vmul.f32 %v277_v58, %v366_v56 }
 0x305   :  { %v170_v18 = vand.u32 2147483647, %v168_v17  ;;  %v169_v30 = vmax.f32 %v168_v17, 0.0 }
 0x307   :  { %v171_v19 = vsub.f32 0.0, %v170_v18 }
 0x309   :  { %v172_v20 = vmul.f32 1.442695, %v171_v19 }
 0x30b   :  { %293 = vpow2.f32 %v172_v20 }
 0x311   :  { %v294_v21 = vpop.eup %293 }
 0x312   :  { %v174_v22 = vadd.f32 1.0, %v294_v21  ;;  %v177_v23 = vmul.f32 -0.5, %v294_v21  ;;  %v180_v25 = vand.u32 2147483647, %v294_v21 }
 0x314   :  { %295 = vlog2.f32 %v174_v22  ;;  %v178_v24 = vadd.f32 1.0, %v177_v23  ;;  %vm181_vm2 = vcmp.lt.f32.partialorder %v180_v25, 0.0004427343 }
 0x316   :  { %v179_v28 = vmul.f32 %v294_v21, %v178_v24 }
 0x31a   :  { %v296_v26 = vpop.eup %295 }
 0x31b   :  { %v176_v27 = vmul.f32 0.6931472, %v296_v26 }
 0x31d   :  { %v182_v31 = vsel %vm181_vm2, %v179_v28, %v176_v27 }
 0x31e   :  { %v183_v33 = vadd.f32 %v182_v31, %v169_v30 }
 0x320   :  { %v187_v34 = vmul.f32 %v185_v32, %v183_v33 }
 0x322   :  { %189 = vrot.lane.b32.xlu1 %v187_v34, %s331_s0 }
 0x394   :  { %v190_v36 = vpop.permute.xlu1 %189 }
 0x395   :  { %v192_v37 = vadd.f32 %v190_v36, %v168_v17 }
 0x397   :  { %195 = vperm.xlu2 %273, %v192_v37  }
 0x39f   :  { %274 = vset.pattern.permute.xlu2 %v338_v2 }
 0x3f1   :  { %v196_v39 = vpop.permute.xlu2 %195 }
 0x3f2   :  { %v199_v40 = vmul.f32 %v280_v38, %v196_v39  ;;  %v243_v10 = vmul.f32 %v281_v7, %v196_v39 }
 0x3f4   :  { %v200_v29 = vadd.f32 %v199_v40, %v168_v17 }
 0x3f6   :  { %v202_v41 = vand.u32 2147483647, %v200_v29  ;;  %v201_v53 = vmax.f32 %v200_v29, 0.0  ;;  %v232_v60 = vmul.f32 %v282_v52, %v200_v29 }
 0x3f8   :  { %v203_v42 = vsub.f32 0.0, %v202_v41 }
 0x3fa   :  { %v204_v43 = vmul.f32 1.442695, %v203_v42 }
 0x3fc   :  { %297 = vpow2.f32 %v204_v43 }
 0x402   :  { %v298_v44 = vpop.eup %297 }
 0x403   :  { %v206_v45 = vadd.f32 1.0, %v298_v44  ;;  %v209_v46 = vmul.f32 -0.5, %v298_v44  ;;  %v212_v48 = vand.u32 2147483647, %v298_v44 }
 0x405   :  { %299 = vlog2.f32 %v206_v45  ;;  %v210_v47 = vadd.f32 1.0, %v209_v46  ;;  %vm213_vm3 = vcmp.lt.f32.partialorder %v212_v48, 0.0004427343 }
 0x407   :  { %v211_v51 = vmul.f32 %v298_v44, %v210_v47 }
 0x40b   :  { %v300_v49 = vpop.eup %299 }
 0x40c   :  { %v208_v50 = vmul.f32 0.6931472, %v300_v49 }
 0x40e   :  { %v214_v55 = vsel %vm213_vm3, %v211_v51, %v208_v50 }
 0x40f   :  { %v215_v59 = vadd.f32 %v214_v55, %v201_v53 }
 0x411   :  { %v234_v61 = vmul.f32 %v283_v54, %v215_v59  ;;  %v219_v62 = vmul.f32 %v217_v57, %v215_v59 }
 0x413   :  { %v235_v0 = vadd.f32 %v234_v61, %v232_v60  ;;  %221 = vrot.lane.b32.xlu1 %v219_v62, %s331_s0 }
 0x415   :  { %v238_v1 = vadd.f32 %v237_v63, %v235_v0 }
 0x417   :  { %v241_v8 = vadd.f32 %v240_v6, %v238_v1 }
 0x419   :  { %v244_v12 = vadd.f32 %v243_v10, %v241_v8 }
 0x485   :  { %v222_v3 = vpop.permute.xlu1 %221 }
 0x486   :  { %v224_v4 = vadd.f32 %v222_v3, %v200_v29 }
 0x488   :  { %247 = vperm.xlu2 %274, %v224_v4  }
 0x4e2   :  { %v248_v11 = vpop.permute.xlu2 %247 }
 0x4e3   :  { %v251_v56 = vmul.f32 %v284_v9, %v248_v11 }
 0x4e5   :  { %v252_v13 = vadd.f32 %v251_v56, %v244_v12 }
 0x4e7   :  { %253 = vst [vmem:[%s384_s2] sm:$0xff] %v252_v13 }
 0x4e8   :  { %258 = vsyncpa [#allocation3], 1 }

</bundles_post_ra>
